<compile_context>
chip_gen: v7x
topology: tpu7x:2x2x1
jax: 0.10.0
libtpu: 0.0.40
codegen_flags: <defaults>
</compile_context>

<pallas_src>
import math
import numpy as np

import jax
import jax.numpy as jnp
from jax.experimental import pallas as pl
from jax.experimental.pallas import tpu as pltpu

_NEG_INF = -1.0e30      # Python float -> jaxpr literal (NOT a captured Array)
_LN_EPS = 1e-12


# ----------------------------------------------------------------------------
# In-kernel helpers (pure functions on values, used inside Pallas kernels)
# ----------------------------------------------------------------------------
def _ln_f(x, g, b):
    """LayerNorm in f32 (espnet eps=1e-12)."""
    mu = jnp.mean(x, axis=-1, keepdims=True)
    var = jnp.mean((x - mu) ** 2, axis=-1, keepdims=True)
    return (x - mu) * jax.lax.rsqrt(var + _LN_EPS) * g + b


def _bf16_dot(a, w, b=None):
    """MXU matmul: bf16 operands, f32 accumulation; optional f32 bias add."""
    y = jnp.dot(a.astype(jnp.bfloat16), w, preferred_element_type=jnp.float32)
    if b is not None:
        y = y + b
    return y


def _mh_attention(q, k, v, mask, nheads):
    """Multi-head masked attention on one batch element, all heads batched.

    q: (Tq, D) f32, k/v: (Tk, D) f32, mask: (1, Tk) or (Tq, Tk) f32 {0,1}.
    Returns (Tq, D) f32 (heads concatenated along lanes).
    """
    Tq, D = q.shape
    Tk = k.shape[0]
    dk = D // nheads
    scale = 1.0 / math.sqrt(dk)

    # Head-major (H, T, dk) views -> one batched matmul per (QK^T, PV) pair.
    qh = jnp.transpose(q.reshape(Tq, nheads, dk), (1, 0, 2)).astype(jnp.bfloat16)
    kh = jnp.transpose(k.reshape(Tk, nheads, dk), (1, 0, 2)).astype(jnp.bfloat16)
    vh = jnp.transpose(v.reshape(Tk, nheads, dk), (1, 0, 2)).astype(jnp.bfloat16)

    # Mask transforms hoisted: one VPU pass total (shared by all heads).
    bias = jnp.where(mask > 0.0, 0.0, _NEG_INF)[None]   # (1, 1|Tq, Tk) additive
    mult = mask[None]                                    # (1, 1|Tq, Tk)

    s = jnp.einsum('hqd,hkd->hqk', qh, kh,
                   preferred_element_type=jnp.float32) * scale + bias
    s = s - jnp.max(s, axis=-1, keepdims=True)
    e = jnp.exp(s)
    p = e / jnp.sum(e, axis=-1, keepdims=True)           # exact normalization
    p = p * mult            # matches torch masked_fill(mask==0, 0.0) after softmax
    ctx = jnp.einsum('hqk,hkd->hqd', p.astype(jnp.bfloat16), vh,
                     preferred_element_type=jnp.float32)
    return jnp.transpose(ctx, (1, 0, 2)).reshape(Tq, D)


# ----------------------------------------------------------------------------
# Pallas kernels
# ----------------------------------------------------------------------------
def make_enc_layer_kernel(nheads):
    """Fused encoder layer: LN -> QKV -> attention -> out-proj -> +res -> LN -> FFN -> +res."""
    def kern(x_ref, kmask_ref,
             ln1g_ref, ln1b_ref, wqkv_ref, bqkv_ref, wo_ref, bo_ref,
             ln2g_ref, ln2b_ref, w1_ref, b1_ref, w2_ref, b2_ref,
             o_ref):
        x = x_ref[...]                       # (T, D) f32
        kmask = kmask_ref[...]               # (1, T) f32
        D = x.shape[-1]

        xn = _ln_f(x, ln1g_ref[...], ln1b_ref[...])
        qkv = _bf16_dot(xn, wqkv_ref[...], bqkv_ref[...])          # (T, 3D)
        ctx = _mh_attention(qkv[:, :D], qkv[:, D:2 * D], qkv[:, 2 * D:],
                            kmask, nheads)
        x = x + _bf16_dot(ctx, wo_ref[...], bo_ref[...])

        xn = _ln_f(x, ln2g_ref[...], ln2b_ref[...])
        h = jnp.maximum(_bf16_dot(xn, w1_ref[...], b1_ref[...]), 0.0)
        x = x + _bf16_dot(h, w2_ref[...], b2_ref[...])
        o_ref[...] = x
    return kern


def make_dec_layer_kernel(nheads):
    """Fused decoder layer: self-attn, src-attn, FFN (pre-norm, residuals)."""
    def kern(x_ref, mem_ref, smask_ref, kmask_ref,
             ln1g_ref, ln1b_ref, wqkv_s_ref, bqkv_s_ref, wo_s_ref, bo_s_ref,
             ln2g_ref, ln2b_ref, wq_c_ref, bq_c_ref, wkv_c_ref, bkv_c_ref,
             wo_c_ref, bo_c_ref,
             ln3g_ref, ln3b_ref, w1_ref, b1_ref, w2_ref, b2_ref,
             o_ref):
        x = x_ref[...]                        # (L, D)
        mem = mem_ref[...]                    # (Tm, D)
        smask = smask_ref[...]                # (L, L) causal+nonpad
        kmask = kmask_ref[...]                # (1, Tm) memory key mask
        D = x.shape[-1]

        # self-attention
        xn = _ln_f(x, ln1g_ref[...], ln1b_ref[...])
        qkv = _bf16_dot(xn, wqkv_s_ref[...], bqkv_s_ref[...])      # (L, 3D)
        ctx = _mh_attention(qkv[:, :D], qkv[:, D:2 * D], qkv[:, 2 * D:],
                            smask, nheads)
        x = x + _bf16_dot(ctx, wo_s_ref[...], bo_s_ref[...])

        # source attention (queries from decoder state, keys/values from memory)
        xn = _ln_f(x, ln2g_ref[...], ln2b_ref[...])
        q = _bf16_dot(xn, wq_c_ref[...], bq_c_ref[...])            # (L, D)
        kv = _bf16_dot(mem, wkv_c_ref[...], bkv_c_ref[...])        # (Tm, 2D)
        ctx = _mh_attention(q, kv[:, :D], kv[:, D:], kmask, nheads)
        x = x + _bf16_dot(ctx, wo_c_ref[...], bo_c_ref[...])

        # feed forward
        xn = _ln_f(x, ln3g_ref[...], ln3b_ref[...])
        h = jnp.maximum(_bf16_dot(xn, w1_ref[...], b1_ref[...]), 0.0)
        x = x + _bf16_dot(h, w2_ref[...], b2_ref[...])
        o_ref[...] = x
    return kern


def make_dec_head_loss_kernel(confidence, low, ignore_id):
    """Fused decoder head: final LN -> vocab projection -> label-smoothing KL sum.

    All constants are Python floats / ints (never jax Arrays) so nothing is
    captured by the kernel closure.
    """
    conf = float(confidence)
    lo = float(low)
    plogp_on = float(confidence * math.log(confidence))
    plogp_off = float(low * math.log(low)) if low > 0.0 else 0.0
    ign = int(ignore_id)

    def kern(x_ref, t_ref, g_ref, bln_ref, w_ref, bo_ref, o_ref):
        xn = _ln_f(x_ref[...], g_ref[...], bln_ref[...])            # (N, D)
        logits = _bf16_dot(xn, w_ref[...], bo_ref[...])             # (N, V) f32
        t = t_ref[...]                                              # (N, 1) int32
        valid = t != ign
        tc = jnp.where(valid, t, 0)
        lane = jax.lax.broadcasted_iota(jnp.int32, logits.shape, 1)
        onehot = lane == tc                                         # (N, V)
        p = jnp.where(onehot, conf, lo)
        plogp = jnp.where(onehot, plogp_on, plogp_off)
        xs = logits - jnp.max(logits, axis=-1, keepdims=True)
        logq = xs - jnp.log(jnp.sum(jnp.exp(xs), axis=-1, keepdims=True))
        kl = (plogp - p * logq) * valid.astype(jnp.float32)
        col = jnp.sum(kl, axis=0, keepdims=True)                    # (1, V)
        o_ref[...] = jnp.sum(col, axis=1, keepdims=True)            # (1, 1)
    return kern


def _linear_relu_kernel(x_ref, w_ref, b_ref, o_ref):
    o_ref[...] = jnp.maximum(_bf16_dot(x_ref[...], w_ref[...], b_ref[...]), 0.0)


def make_embed_out_kernel(xscale):
    def kern(x_ref, w_ref, b_ref, pe_ref, o_ref):
        o_ref[...] = _bf16_dot(x_ref[...], w_ref[...], b_ref[...]) * xscale + pe_ref[...]
    return kern


def _layernorm_kernel(x_ref, g_ref, b_ref, o_ref):
    o_ref[...] = _ln_f(x_ref[...], g_ref[...], b_ref[...])


# ----------------------------------------------------------------------------
# pallas_call wrappers
# ----------------------------------------------------------------------------
def _full_spec(shape):
    zeros = (0,) * len(shape)
    return pl.BlockSpec(tuple(shape), lambda b: zeros)


def _batch_spec(shape):
    rest = (0,) * (len(shape) - 1)
    return pl.BlockSpec((None,) + tuple(shape[1:]), lambda b: (b,) + rest)


def encoder_layer(x, kmask, lp, nheads):
    B = x.shape[0]
    ins = [x, kmask,
           lp["ln1"]["g"], lp["ln1"]["b"],
           lp["attn"]["wqkv"], lp["attn"]["bqkv"],
           lp["attn"]["wo"], lp["attn"]["bo"],
           lp["ln2"]["g"], lp["ln2"]["b"],
           lp["ff"]["w1"], lp["ff"]["b1"],
           lp["ff"]["w2"], lp["ff"]["b2"]]
    specs = ([_batch_spec(x.shape), _batch_spec(kmask.shape)]
             + [_full_spec(a.shape) for a in ins[2:]])
    return pl.pallas_call(
        make_enc_layer_kernel(nheads),
        grid=(B,),
        in_specs=specs,
        out_specs=_batch_spec(x.shape),
        out_shape=jax.ShapeDtypeStruct(x.shape, jnp.float32),
        compiler_params=pltpu.CompilerParams(dimension_semantics=("parallel",)),
    )(*ins)


def decoder_layer(x, memory, smask, kmask, lp, nheads):
    B = x.shape[0]
    ins = [x, memory, smask, kmask,
           lp["ln1"]["g"], lp["ln1"]["b"],
           lp["self_attn"]["wqkv"], lp["self_attn"]["bqkv"],
           lp["self_attn"]["wo"], lp["self_attn"]["bo"],
           lp["ln2"]["g"], lp["ln2"]["b"],
           lp["src_attn"]["wq"], lp["src_attn"]["bq"],
           lp["src_attn"]["wkv"], lp["src_attn"]["bkv"],
           lp["src_attn"]["wo"], lp["src_attn"]["bo"],
           lp["ln3"]["g"], lp["ln3"]["b"],
           lp["ff"]["w1"], lp["ff"]["b1"],
           lp["ff"]["w2"], lp["ff"]["b2"]]
    specs = ([_batch_spec(x.shape), _batch_spec(memory.shape),
              _batch_spec(smask.shape), _batch_spec(kmask.shape)]
             + [_full_spec(a.shape) for a in ins[4:]])
    return pl.pallas_call(
        make_dec_layer_kernel(nheads),
        grid=(B,),
        in_specs=specs,
        out_specs=_batch_spec(x.shape),
        out_shape=jax.ShapeDtypeStruct(x.shape, jnp.float32),
        compiler_params=pltpu.CompilerParams(dimension_semantics=("parallel",)),
    )(*ins)


def linear_relu(x, p):
    # TODO(synk): M-tiled grid for realistic patch counts; full block at toy shapes.
    M = x.shape[0]
    N = p["w"].shape[1]
    return pl.pallas_call(
        _linear_relu_kernel,
        out_shape=jax.ShapeDtypeStruct((M, N), jnp.float32),
    )(x, p["w"], p["b"])


def embed_out(x, p, pe, xscale):
    """Linear(adim*F2, adim) fused with * sqrt(adim) + positional encoding."""
    B, T, K = x.shape
    adim = p["w"].shape[1]
    ins = [x, p["w"], p["b"], pe]
    specs = [_batch_spec(x.shape), _full_spec(p["w"].shape),
             _full_spec(p["b"].shape), _full_spec(pe.shape)]
    return pl.pallas_call(
        make_embed_out_kernel(xscale),
        grid=(B,),
        in_specs=specs,
        out_specs=_batch_spec((B, T, adim)),
        out_shape=jax.ShapeDtypeStruct((B, T, adim), jnp.float32),
        compiler_params=pltpu.CompilerParams(dimension_semantics=("parallel",)),
    )(*ins)


def layer_norm(x, p):
    shp = x.shape
    D = shp[-1]
    x2 = x.reshape(-1, D)
    out = pl.pallas_call(
        _layernorm_kernel,
        out_shape=jax.ShapeDtypeStruct(x2.shape, jnp.float32),
    )(x2, p["g"], p["b"])
    return out.reshape(shp)


def decoder_head_and_loss(x, ys_out, p_after_ln, p_out, odim, smoothing,
                          ignore_id, batch_size):
    """espnet LabelSmoothingLoss (normalize_length=False) fused with final LN + out proj."""
    # TODO(synk): vocab-tiled grid + online logsumexp for realistic odim (~5000).
    B, L, D = x.shape
    N = B * L
    x2 = x.reshape(N, D)
    t = ys_out.reshape(N, 1).astype(jnp.int32)
    confidence = 1.0 - smoothing
    low = smoothing / (odim - 1)
    total = pl.pallas_call(
        make_dec_head_loss_kernel(confidence, low, ignore_id),
        out_shape=jax.ShapeDtypeStruct((1, 1), jnp.float32),
    )(x2, t, p_after_ln["g"], p_after_ln["b"], p_out["w"], p_out["b"])
    return total[0, 0] / batch_size


# ----------------------------------------------------------------------------
# Glue (patch extraction / masks / embeddings)
# ----------------------------------------------------------------------------
def im2col(x, k=3, stride=2):
    """x: (B, C, H, W) NCHW -> patches (B*Ho*Wo, C*k*k), flatten order (C, kH, kW)."""
    B, C, H, W = x.shape
    Ho = (H - k) // stride + 1
    Wo = (W - k) // stride + 1
    cols = []
    for ki in range(k):
        for kj in range(k):
            cols.append(x[:, :,
                          ki: ki + stride * (Ho - 1) + 1: stride,
                          kj: kj + stride * (Wo - 1) + 1: stride])
    p = jnp.stack(cols, axis=2)                      # (B, C, k*k, Ho, Wo)
    p = p.transpose(0, 3, 4, 1, 2).reshape(B * Ho * Wo, C * k * k)
    return p, (B, Ho, Wo)


def positional_encoding(T, d):
    pos = np.arange(T, dtype=np.float32)[:, None]
    div = np.exp(np.arange(0, d, 2, dtype=np.float32) * -(math.log(10000.0) / d))
    pe = np.zeros((T, d), dtype=np.float32)
    pe[:, 0::2] = np.sin(pos * div)
    pe[:, 1::2] = np.cos(pos * div)
    return jnp.asarray(pe)


def encoder_forward(p, xs, src_mask, adim, aheads):
    """Conv2dSubsampling front-end + pre-norm self-attention blocks."""
    B, T, F = xs.shape
    x4 = xs.reshape(B, 1, T, F)  # NCHW, Cin=1

    # Conv2d(1, adim, 3, stride=2) + ReLU  (im2col + Pallas matmul)
    patches, (_, H1, W1) = im2col(x4)
    h = linear_relu(patches, p["embed"]["conv1"])
    h = h.reshape(B, H1, W1, adim).transpose(0, 3, 1, 2)          # back to NCHW

    # Conv2d(adim, adim, 3, stride=2) + ReLU
    patches, (_, H2, W2) = im2col(h)
    h = linear_relu(patches, p["embed"]["conv2"])
    # torch: x.transpose(1,2).view(b, t, c*f)  (flatten order = (C, F))
    h = h.reshape(B, H2, W2, adim).transpose(0, 1, 3, 2).reshape(B, H2, adim * W2)

    # Linear(adim*F2, adim) fused with * sqrt(adim) + PE (precomputed table).
    pe = p["pe"][:H2]                                             # (H2, adim)
    h = embed_out(h, p["embed"]["out"], pe, math.sqrt(adim))      # (B, H2, adim)

    mask = src_mask[:, :-2:2][:, :-2:2]        # (B, T2) subsampled non-pad mask
    kmask = mask.reshape(B, 1, H2)             # key-wise mask, broadcast in-kernel

    for lp in p["layers"]:
        h = encoder_layer(h, kmask, lp, aheads)
    h = layer_norm(h, p["after_ln"])
    return h, mask


def decoder_forward(p, ys_in, ys_mask, memory, memory_mask, adim, aheads):
    B, L = ys_in.shape
    D = adim
    x = p["embed"][ys_in] * math.sqrt(D) + p["pe"][:L][None]
    Tm = memory.shape[1]
    kmask_src = memory_mask.reshape(B, 1, Tm)

    for lp in p["layers"]:
        x = decoder_layer(x, memory, ys_mask, kmask_src, lp, aheads)
    return x   # pre-after-norm states; final LN + projection fused into the loss kernel


def add_sos_eos_np(ys_pad, sos, eos, ignore_id):
    B, Lmax = ys_pad.shape
    ys_in = np.full((B, Lmax + 1), eos, dtype=np.int32)
    ys_out = np.full((B, Lmax + 1), ignore_id, dtype=np.int32)
    for b in range(B):
        y = ys_pad[b][ys_pad[b] != ignore_id]
        n = len(y)
        ys_in[b, 0] = sos
        ys_in[b, 1:1 + n] = y
        ys_out[b, :n] = y
        ys_out[b, n] = eos
    return ys_in, ys_out


def e2e_forward(params, xs_pad, ilens, ys_pad, cfg):
    """Mirrors E2E.forward with mtlalpha=0: returns loss = loss_att."""
    B = xs_pad.shape[0]
    tmax = int(max(int(i) for i in ilens))
    xs_pad = xs_pad[:, :tmax]
    # Host-side glue masks (once per call; cheap relative to kernels).
    src_mask = (np.arange(tmax)[None, :] < np.asarray(ilens)[:, None]).astype(np.float32)
    src_mask = jnp.asarray(src_mask)

    hs_pad, hs_mask = encoder_forward(
        params["encoder"], xs_pad, src_mask, cfg["adim"], cfg["aheads"]
    )

    sos = eos = cfg["odim"] - 1
    ys_in, ys_out = add_sos_eos_np(np.asarray(ys_pad), sos, eos, cfg["ignore_id"])
    L = ys_in.shape[1]
    nonpad = ys_in != cfg["ignore_id"]
    ys_mask = (nonpad[:, None, :] & np.tril(np.ones((L, L), bool))[None]).astype(np.float32)

    dec_states = decoder_forward(
        params["decoder"], jnp.asarray(ys_in), jnp.asarray(ys_mask),
        hs_pad, hs_mask, cfg["adim"], cfg["aheads"]
    )
    loss_att = decoder_head_and_loss(
        dec_states, jnp.asarray(ys_out),
        params["decoder"]["after_ln"], params["decoder"]["out"],
        cfg["odim"], cfg["lsm_weight"], cfg["ignore_id"], batch_size=B,
    )
    # TODO(synk): CTC loss branch (mtlalpha>0) not implemented; this config uses mtlalpha=0.
    return loss_att


# ----------------------------------------------------------------------------
# Parameter setup (deterministic synthetic weights; matmul weights stored bf16 once)
# ----------------------------------------------------------------------------
def init_params(key, idim, odim, adim, aheads, eunits, dunits, elayers, dlayers,
                max_len=256):
    keys = iter(jax.random.split(key, 512))

    def dense_w(din, dout):
        limit = math.sqrt(6.0 / (din + dout))
        return jax.random.uniform(next(keys), (din, dout), jnp.float32, -limit, limit)

    def lin(din, dout):
        return {"w": dense_w(din, dout).astype(jnp.bfloat16),
                "b": jnp.zeros((1, dout), jnp.float32)}

    def conv(cin, cout, k=3):
        fan_in = cin * k * k
        limit = math.sqrt(1.0 / fan_in)
        # pre-flattened for im2col matmul: (Cin*k*k, Cout), flatten order (C, kH, kW)
        w = jax.random.uniform(next(keys), (fan_in, cout), jnp.float32, -limit, limit)
        return {"w": w.astype(jnp.bfloat16), "b": jnp.zeros((1, cout), jnp.float32)}

    def ln(d):
        return {"g": jnp.ones((1, d), jnp.float32), "b": jnp.zeros((1, d), jnp.float32)}

    def mha_self(d):
        wq, wk, wv = dense_w(d, d), dense_w(d, d), dense_w(d, d)
        return {"wqkv": jnp.concatenate([wq, wk, wv], axis=1).astype(jnp.bfloat16),
                "bqkv": jnp.zeros((1, 3 * d), jnp.float32),
                "wo": dense_w(d, d).astype(jnp.bfloat16),
                "bo": jnp.zeros((1, d), jnp.float32)}

    def mha_src(d):
        wk, wv = dense_w(d, d), dense_w(d, d)
        return {"wq": dense_w(d, d).astype(jnp.bfloat16),
                "bq": jnp.zeros((1, d), jnp.float32),
                "wkv": jnp.concatenate([wk, wv], axis=1).astype(jnp.bfloat16),
                "bkv": jnp.zeros((1, 2 * d), jnp.float32),
                "wo": dense_w(d, d).astype(jnp.bfloat16),
                "bo": jnp.zeros((1, d), jnp.float32)}

    def ff(d, units):
        return {"w1": dense_w(d, units).astype(jnp.bfloat16),
                "b1": jnp.zeros((1, units), jnp.float32),
                "w2": dense_w(units, d).astype(jnp.bfloat16),
                "b2": jnp.zeros((1, d), jnp.float32)}

    pe_table = positional_encoding(max_len, adim)   # precomputed once (review #12)

    f2 = ((idim - 1) // 2 - 1) // 2
    enc = {
        "embed": {"conv1": conv(1, adim), "conv2": conv(adim, adim),
                  "out": lin(adim * f2, adim)},
        "layers": [
            {"ln1": ln(adim), "attn": mha_self(adim), "ln2": ln(adim),
             "ff": ff(adim, eunits)}
            for _ in range(elayers)
        ],
        "after_ln": ln(adim),
        "pe": pe_table,
    }
    dec = {
        "embed": 0.1 * jax.random.normal(next(keys), (odim, adim), jnp.float32),
        "layers": [
            {"ln1": ln(adim), "self_attn": mha_self(adim),
             "ln2": ln(adim), "src_attn": mha_src(adim),
             "ln3": ln(adim), "ff": ff(adim, dunits)}
            for _ in range(dlayers)
        ],
        "after_ln": ln(adim),
        "out": lin(adim, odim),
        "pe": pe_table,
    }
    return {"encoder": enc, "decoder": dec}


if __name__ == "__main__":
    key = jax.random.PRNGKey(0)
    k_par, k_x, k_y = jax.random.split(key, 3)

    # Small shapes consistent with the module.
    B, Tmax, idim, odim = 2, 30, 20, 11
    cfg = dict(adim=32, aheads=4, eunits=64, dunits=64, elayers=2, dlayers=2,
               odim=odim, lsm_weight=0.1, ignore_id=-1)

    params = init_params(k_par, idim, odim, cfg["adim"], cfg["aheads"],
                         cfg["eunits"], cfg["dunits"], cfg["elayers"], cfg["dlayers"])

    ilens = [30, 16]
    xs_pad = jax.random.normal(k_x, (B, Tmax, idim), jnp.float32)
    # zero-out padded frames of the shorter utterance (like a padded batch)
    pad_mask = (np.arange(Tmax)[None, :, None] < np.asarray(ilens)[:, None, None])
    xs_pad = xs_pad * jnp.asarray(pad_mask.astype(np.float32))

    # target token ids in [1, odim-2], padded with ignore_id=-1
    ylens = [7, 5]
    Lmax = max(ylens)
    ys_np = np.full((B, Lmax), -1, dtype=np.int32)
    toks = np.asarray(jax.random.randint(k_y, (B, Lmax), 1, odim - 1))
    for b in range(B):
        ys_np[b, :ylens[b]] = toks[b, :ylens[b]]

    loss = e2e_forward(params, xs_pad, ilens, ys_np, cfg)
    loss = jax.block_until_ready(loss)
    assert np.isfinite(float(loss)), f"loss is not finite: {loss}"
    print("KERNEL_OK")
</pallas_src>

<mosaic_0001>
module attributes {stable_mosaic.version = 11 : i64} {
  func.func @_linear_relu_kernel(%arg0: memref<252x9xf32, #tpu.memory_space<vmem>>, %arg1: memref<9x32xbf16, #tpu.memory_space<vmem>>, %arg2: memref<1x32xf32, #tpu.memory_space<vmem>>, %arg3: memref<252x32xf32, #tpu.memory_space<vmem>>) attributes {dimension_semantics = [], scalar_prefetch = 0 : i64, scratch_operands = 0 : i64, tpu.core_type = #tpu.core_type<tc>} {
    %c0 = arith.constant 0 : index
    %c0_0 = arith.constant 0 : index
    %0 = vector.load %arg0[%c0, %c0_0] : memref<252x9xf32, #tpu.memory_space<vmem>>, vector<252x9xf32>
    %c0_1 = arith.constant 0 : index
    %c0_2 = arith.constant 0 : index
    %1 = vector.load %arg1[%c0_1, %c0_2] : memref<9x32xbf16, #tpu.memory_space<vmem>>, vector<9x32xbf16>
    %c0_3 = arith.constant 0 : index
    %c0_4 = arith.constant 0 : index
    %2 = vector.load %arg2[%c0_3, %c0_4] : memref<1x32xf32, #tpu.memory_space<vmem>>, vector<1x32xf32>
    %3 = arith.truncf %0 : vector<252x9xf32> to vector<252x9xbf16>
    %cst = arith.constant dense<0.000000e+00> : vector<252x32xf32>
    %4 = tpu.matmul %3, %1, %cst {dimension_numbers = #tpu.dot_dimension_numbers<[1], [0], [0], [1], [0, 0, 1, 1], [], []>} : vector<252x9xbf16>, vector<9x32xbf16>, vector<252x32xf32> -> vector<252x32xf32>
    %5 = vector.broadcast %2 : vector<1x32xf32> to vector<252x32xf32>
    %6 = arith.addf %4, %5 : vector<252x32xf32>
    %cst_5 = arith.constant 0.000000e+00 : f32
    %7 = vector.broadcast %cst_5 : f32 to vector<252x32xf32>
    %8 = arith.maximumf %6, %7 : vector<252x32xf32>
    %c0_6 = arith.constant 0 : index
    %c0_7 = arith.constant 0 : index
    %9 = vector.load %arg3[%c0_6, %c0_7] : memref<252x32xf32, #tpu.memory_space<vmem>>, vector<252x32xf32>
    tpu.vector_store %arg3[%c0_6, %c0_7], %8 {strides = array<i32>} : memref<252x32xf32, #tpu.memory_space<vmem>>, vector<252x32xf32>,
    return
  }
}

</mosaic_0001>

<bundles_post_ra>
// kernel: tpu_custom_call.1
= control target key start
LH: loop header
LB: loop body
LE: loop exit
PB: predicated region body
PF: predicated region fallthrough
CT: control target
= control target key end

     0   :  { %vm126_vm0 = vcmask 1043456   ;;  %vm127_vm1 = vcmask 1044480   ;;  %v437_v1 = vmov 65535   ;;  %vm77_vm2 = vcmask 72704   ;;  %s738_s1 = inlined_call_operand.vmem [shape: bf16[9,32], index: 1, kind: input, shape index: {}]   ;;  %s739_s0 = inlined_call_operand.vmem [shape: f32[252,9], index: 0, kind: input, shape index: {}]   ;;  %s740_s2 = inlined_call_operand.vmem [shape: f32[1,32], index: 2, kind: input, shape index: {}]   ;;  %s741_s3 = inlined_call_operand.vmem [shape: f32[252,32], index: 3, kind: output, shape index: {}]  }
   0x1   :  { %v436_v0 = vld [vmem:[%s738_s1] sm:$0x1f]   ;;  %v128_v2 = vsel %vm126_vm0, 4294967295, %v437_v1  ;;  %v16_v4 = vld [vmem:[%s739_s0 + $0x8] sm:$0xff]  ;;  %v17_v9 = vld [vmem:[%s739_s0 + $0x10] sm:$0xff]  ;;  %vm326_vm3 = vcmask 261120  }
   0x2   :  { %v15_v3 = vld [vmem:[%s739_s0] sm:$0xff]  ;;  %v129_v6 = vsel %vm127_vm1, %v128_v2, 0  ;;  %v32_v8 = vld [vmem:[%s739_s0 + $0x88] sm:$0xff]  ;;  %v18_v10 = vld [vmem:[%s739_s0 + $0x18] sm:$0xff]  ;;  %vm358_vm4 = vcmask 257024  }
   0x3   :  { %v31_v5 = vld [vmem:[%s739_s0 + $0x80] sm:$0xff]  ;;  %v50_v7 = vpack.c.bf16 %v16_v4, %v15_v3  ;;  %v131_v11 = vand.u32 %v436_v0, %v129_v6  ;;  %v33_v13 = vld [vmem:[%s739_s0 + $0x90] sm:$0xff]  ;;  %v34_v14 = vld [vmem:[%s739_s0 + $0x98] sm:$0xff]  ;;  %v51_v19 = vpack.c.bf16 %v18_v10, %v17_v9 }
   0x4   :  { %v58_v12 = vpack.c.bf16 %v32_v8, %v31_v5  ;;  %v19_v15 = vld [vmem:[%s739_s0 + $0x20] sm:$0xff]  ;;  %v20_v16 = vld [vmem:[%s739_s0 + $0x28] sm:$0xff]  ;;  %v59_v20 = vpack.c.bf16 %v34_v14, %v33_v13  ;;  %v21_v23 = vld [vmem:[%s739_s0 + $0x30] sm:$0xff] }
   0x5   :  { %401 = vmatprep.mubr.msk.bf16.mxu0 %vm77_vm2, %v50_v7  ;;  %v35_v17 = vld [vmem:[%s739_s0 + $0xa0] sm:$0xff]  ;;  %v36_v18 = vld [vmem:[%s739_s0 + $0xa8] sm:$0xff]  ;;  %399 = vmatprep.subr.bf16.mxu0 %v131_v11  ;;  %v52_v21 = vpack.c.bf16 %v20_v16, %v19_v15  ;;  %v22_v24 = vld [vmem:[%s739_s0 + $0x38] sm:$0xff] }
   0x6   :  { %433 = vmatprep.subr.bf16.mxu1 %v131_v11  ;;  %400 = vmatpush3.bf16.msra.mxu0 %v131_v11  ;;  %v60_v22 = vpack.c.bf16 %v36_v18, %v35_v17  ;;  %v37_v25 = vld [vmem:[%s739_s0 + $0xb0] sm:$0xff]  ;;  %v38_v26 = vld [vmem:[%s739_s0 + $0xb8] sm:$0xff]  ;;  %v23_v27 = vld [vmem:[%s739_s0 + $0x40] sm:$0xff]  ;;  %v53_v31 = vpack.c.bf16 %v22_v24, %v21_v23 }
   0x7   :  { %434 = vmatpush3.bf16.msra.mxu1 %v131_v11  ;;  %417 = vmatprep.mubr.msk.bf16.mxu1 %vm77_vm2, %v58_v12  ;;  %v24_v28 = vld [vmem:[%s739_s0 + $0x48] sm:$0xff]  ;;  %v39_v29 = vld [vmem:[%s739_s0 + $0xc0] sm:$0xff]  ;;  %v61_v32 = vpack.c.bf16 %v38_v26, %v37_v25  ;;  %v25_v35 = vld [vmem:[%s739_s0 + $0x50] sm:$0xff] }
   0x8   :  { %v40_v30 = vld [vmem:[%s739_s0 + $0xc8] sm:$0xff]  ;;  %v54_v33 = vpack.c.bf16 %v24_v28, %v23_v27  ;;  %v26_v36 = vld [vmem:[%s739_s0 + $0x58] sm:$0xff]  ;;  %v41_v37 = vld [vmem:[%s739_s0 + $0xd0] sm:$0xff] }
   0x9   :  { %402 = vmatmul.mubr.msk.bf16.vlgmr.msra.gmra.mrb[0].mxu0 %vm77_vm2, %v51_v19  ;;  %v62_v34 = vpack.c.bf16 %v40_v30, %v39_v29  ;;  %v42_v38 = vld [vmem:[%s739_s0 + $0xd8] sm:$0xff]  ;;  %v27_v39 = vld [vmem:[%s739_s0 + $0x60] sm:$0xff]  ;;  %v28_v40 = vld [vmem:[%s739_s0 + $0x68] sm:$0xff]  ;;  %v55_v43 = vpack.c.bf16 %v26_v36, %v25_v35 }
   0xa   :  { %418 = vmatmul.mubr.msk.bf16.vlgmr.msra.gmra.mrb[0].mxu1 %vm77_vm2, %v59_v20  ;;  %405 = vmatprep.mubr.msk.bf16.mxu0 %vm77_vm2, %v52_v21  ;;  %v43_v41 = vld [vmem:[%s739_s0 + $0xe0] sm:$0xff]  ;;  %v44_v42 = vld [vmem:[%s739_s0 + $0xe8] sm:$0xff]  ;;  %v63_v44 = vpack.c.bf16 %v42_v38, %v41_v37  ;;  %v56_v45 = vpack.c.bf16 %v28_v40, %v27_v39  ;;  %v29_v47 = vld [vmem:[%s739_s0 + $0x70] sm:$0xff] }
   0xb   :  { %421 = vmatprep.mubr.msk.bf16.mxu1 %vm77_vm2, %v60_v22  ;;  %v64_v46 = vpack.c.bf16 %v44_v42, %v43_v41  ;;  %v30_v48 = vld [vmem:[%s739_s0 + $0x78] sm:$0xff]  ;;  %v45_v49 = vld [vmem:[%s739_s0 + $0xf0] sm:$0xff]  ;;  %v576_v53 = vld [vmem:[%s740_s2] ss:$0 sm:$0xff] }
   0xc   :  { %v46_v50 = vld [vmem:[%s739_s0 + $0xf8] sm:$0xf]  ;;  %v57_v51 = vpack.c.bf16 %v30_v48, %v29_v47 }
   0xd   :  { %v65_v52 = vpack.c.bf16 %v46_v50, %v45_v49 }
  0x11   :  { %406 = vmatmul.mubr.msk.bf16.gmra.mrb[4].mxu0 %vm77_vm2, %v53_v31 }
  0x12   :  { %422 = vmatmul.mubr.msk.bf16.gmra.mrb[4].mxu1 %vm77_vm2, %v61_v32  ;;  %409 = vmatprep.mubr.msk.bf16.mxu0 %vm77_vm2, %v54_v33 }
  0x13   :  { %425 = vmatprep.mubr.msk.bf16.mxu1 %vm77_vm2, %v62_v34 }
  0x19   :  { %410 = vmatmul.mubr.msk.bf16.gmra.mrb[8].mxu0 %vm77_vm2, %v55_v43 }
  0x1a   :  { %426 = vmatmul.mubr.msk.bf16.gmra.mrb[8].mxu1 %vm77_vm2, %v63_v44  ;;  %413 = vmatprep.mubr.msk.bf16.mxu0 %vm77_vm2, %v56_v45 }
  0x1b   :  { %429 = vmatprep.mubr.msk.bf16.mxu1 %vm77_vm2, %v64_v46 }
  0x21   :  { %414 = vmatmul.mubr.msk.bf16.gmra.mrb[12].mxu0 %vm77_vm2, %v57_v51 }
  0x22   :  { %430 = vmatmul.mubr.msk.bf16.gmra.mrb[12].mxu1 %vm77_vm2, %v65_v52 }
  0xdc   :  { %v403_v54 = vpop.f32.mrb[0].mxu0 }
  0xdd   :  { %v419_v55 = vpop.f32.mrb[0].mxu1  ;;  %v176_v56 = vadd.f32 %v403_v54, %v576_v53  ;;  %v167_v58 = vpop.f32.mrb[1].mxu0 }
  0xde   :  { %v240_v57 = vadd.f32 %v419_v55, %v576_v53  ;;  %v231_v59 = vpop.f32.mrb[1].mxu1  ;;  %v168_v60 = vadd.f32 %v576_v53, %v167_v58  ;;  %v404_v62 = vpop.f32.mrb[2].mxu0 }
  0xdf   :  { %v232_v61 = vadd.f32 %v576_v53, %v231_v59  ;;  %v420_v63 = vpop.f32.mrb[2].mxu1  ;;  %v296_v0 = vmax.f32 %v176_v56, 0.0  ;;  %v179_v2 = vadd.f32 %v404_v62, %v576_v53  ;;  %v170_v4 = vpop.f32.mrb[3].mxu0 }
  0xe0   :  { %v312_v1 = vmax.f32 %v240_v57, 0.0  ;;  %v243_v3 = vadd.f32 %v420_v63, %v576_v53  ;;  %v234_v5 = vpop.f32.mrb[3].mxu1  ;;  %v294_v6 = vmax.f32 %v168_v60, 0.0  ;;  %v171_v8 = vadd.f32 %v576_v53, %v170_v4 }
  0xe1   :  { %v310_v7 = vmax.f32 %v232_v61, 0.0  ;;  %v235_v9 = vadd.f32 %v576_v53, %v234_v5  ;;  %329 = vst.msk [vmem:[%s741_s3 + $0x10] sm:$0xff] %vm326_vm3, %v296_v0  ;;  %v297_v10 = vmax.f32 %v179_v2, 0.0 }
  0xe2   :  { %345 = vst.msk [vmem:[%s741_s3 + $0x90] sm:$0xff] %vm326_vm3, %v312_v1  ;;  %v313_v11 = vmax.f32 %v243_v3, 0.0  ;;  %327 = vst.msk [vmem:[%s741_s3] sm:$0xff] %vm326_vm3, %v294_v6  ;;  %v295_v12 = vmax.f32 %v171_v8, 0.0 }
  0xe3   :  { %343 = vst.msk [vmem:[%s741_s3 + $0x80] sm:$0xff] %vm326_vm3, %v310_v7  ;;  %v311_v13 = vmax.f32 %v235_v9, 0.0  ;;  %330 = vst.msk [vmem:[%s741_s3 + $0x18] sm:$0xff] %vm326_vm3, %v297_v10 }
  0xe4   :  { %346 = vst.msk [vmem:[%s741_s3 + $0x98] sm:$0xff] %vm326_vm3, %v313_v11  ;;  %328 = vst.msk [vmem:[%s741_s3 + $0x8] sm:$0xff] %vm326_vm3, %v295_v12  ;;  %v407_v14 = vpop.f32.mrb[4].mxu0 }
  0xe5   :  { %344 = vst.msk [vmem:[%s741_s3 + $0x88] sm:$0xff] %vm326_vm3, %v311_v13  ;;  %v423_v15 = vpop.f32.mrb[4].mxu1  ;;  %v192_v16 = vadd.f32 %v407_v14, %v576_v53  ;;  %v183_v18 = vpop.f32.mrb[5].mxu0 }
  0xe6   :  { %v256_v17 = vadd.f32 %v423_v15, %v576_v53  ;;  %v247_v19 = vpop.f32.mrb[5].mxu1  ;;  %v184_v20 = vadd.f32 %v576_v53, %v183_v18  ;;  %v408_v22 = vpop.f32.mrb[6].mxu0 }
  0xe7   :  { %v248_v21 = vadd.f32 %v576_v53, %v247_v19  ;;  %v424_v23 = vpop.f32.mrb[6].mxu1  ;;  %v300_v24 = vmax.f32 %v192_v16, 0.0  ;;  %v195_v26 = vadd.f32 %v408_v22, %v576_v53  ;;  %v186_v28 = vpop.f32.mrb[7].mxu0 }
  0xe8   :  { %v316_v25 = vmax.f32 %v256_v17, 0.0  ;;  %v259_v27 = vadd.f32 %v424_v23, %v576_v53  ;;  %v250_v29 = vpop.f32.mrb[7].mxu1  ;;  %v298_v30 = vmax.f32 %v184_v20, 0.0  ;;  %v187_v32 = vadd.f32 %v576_v53, %v186_v28 }
  0xe9   :  { %v314_v31 = vmax.f32 %v248_v21, 0.0  ;;  %v251_v33 = vadd.f32 %v576_v53, %v250_v29  ;;  %333 = vst.msk [vmem:[%s741_s3 + $0x30] sm:$0xff] %vm326_vm3, %v300_v24  ;;  %v301_v34 = vmax.f32 %v195_v26, 0.0 }
  0xea   :  { %349 = vst.msk [vmem:[%s741_s3 + $0xb0] sm:$0xff] %vm326_vm3, %v316_v25  ;;  %v317_v35 = vmax.f32 %v259_v27, 0.0  ;;  %331 = vst.msk [vmem:[%s741_s3 + $0x20] sm:$0xff] %vm326_vm3, %v298_v30  ;;  %v299_v36 = vmax.f32 %v187_v32, 0.0 }
  0xeb   :  { %347 = vst.msk [vmem:[%s741_s3 + $0xa0] sm:$0xff] %vm326_vm3, %v314_v31  ;;  %v315_v37 = vmax.f32 %v251_v33, 0.0  ;;  %334 = vst.msk [vmem:[%s741_s3 + $0x38] sm:$0xff] %vm326_vm3, %v301_v34 }
  0xec   :  { %350 = vst.msk [vmem:[%s741_s3 + $0xb8] sm:$0xff] %vm326_vm3, %v317_v35  ;;  %332 = vst.msk [vmem:[%s741_s3 + $0x28] sm:$0xff] %vm326_vm3, %v299_v36  ;;  %v411_v38 = vpop.f32.mrb[8].mxu0 }
  0xed   :  { %348 = vst.msk [vmem:[%s741_s3 + $0xa8] sm:$0xff] %vm326_vm3, %v315_v37  ;;  %v427_v39 = vpop.f32.mrb[8].mxu1  ;;  %v208_v40 = vadd.f32 %v411_v38, %v576_v53  ;;  %v199_v42 = vpop.f32.mrb[9].mxu0 }
  0xee   :  { %v272_v41 = vadd.f32 %v427_v39, %v576_v53  ;;  %v263_v43 = vpop.f32.mrb[9].mxu1  ;;  %v200_v44 = vadd.f32 %v576_v53, %v199_v42  ;;  %v412_v46 = vpop.f32.mrb[10].mxu0 }
  0xef   :  { %v264_v45 = vadd.f32 %v576_v53, %v263_v43  ;;  %v428_v47 = vpop.f32.mrb[10].mxu1  ;;  %v304_v48 = vmax.f32 %v208_v40, 0.0  ;;  %v211_v50 = vadd.f32 %v412_v46, %v576_v53  ;;  %v202_v52 = vpop.f32.mrb[11].mxu0 }
  0xf0   :  { %v320_v49 = vmax.f32 %v272_v41, 0.0  ;;  %v275_v51 = vadd.f32 %v428_v47, %v576_v53  ;;  %v266_v54 = vpop.f32.mrb[11].mxu1  ;;  %v302_v55 = vmax.f32 %v200_v44, 0.0  ;;  %v203_v57 = vadd.f32 %v576_v53, %v202_v52 }
  0xf1   :  { %v318_v56 = vmax.f32 %v264_v45, 0.0  ;;  %v267_v58 = vadd.f32 %v576_v53, %v266_v54  ;;  %337 = vst.msk [vmem:[%s741_s3 + $0x50] sm:$0xff] %vm326_vm3, %v304_v48  ;;  %v305_v59 = vmax.f32 %v211_v50, 0.0 }
  0xf2   :  { %353 = vst.msk [vmem:[%s741_s3 + $0xd0] sm:$0xff] %vm326_vm3, %v320_v49  ;;  %v321_v60 = vmax.f32 %v275_v51, 0.0  ;;  %335 = vst.msk [vmem:[%s741_s3 + $0x40] sm:$0xff] %vm326_vm3, %v302_v55  ;;  %v303_v61 = vmax.f32 %v203_v57, 0.0 }
  0xf3   :  { %351 = vst.msk [vmem:[%s741_s3 + $0xc0] sm:$0xff] %vm326_vm3, %v318_v56  ;;  %v319_v62 = vmax.f32 %v267_v58, 0.0  ;;  %338 = vst.msk [vmem:[%s741_s3 + $0x58] sm:$0xff] %vm326_vm3, %v305_v59 }
  0xf4   :  { %354 = vst.msk [vmem:[%s741_s3 + $0xd8] sm:$0xff] %vm326_vm3, %v321_v60  ;;  %336 = vst.msk [vmem:[%s741_s3 + $0x48] sm:$0xff] %vm326_vm3, %v303_v61  ;;  %v415_v63 = vpop.f32.mrb[12].mxu0 }
  0xf5   :  { %352 = vst.msk [vmem:[%s741_s3 + $0xc8] sm:$0xff] %vm326_vm3, %v319_v62  ;;  %v431_v0 = vpop.f32.mrb[12].mxu1  ;;  %v224_v1 = vadd.f32 %v415_v63, %v576_v53  ;;  %v215_v3 = vpop.f32.mrb[13].mxu0 }
  0xf6   :  { %v288_v2 = vadd.f32 %v431_v0, %v576_v53  ;;  %v279_v4 = vpop.f32.mrb[13].mxu1  ;;  %v216_v5 = vadd.f32 %v576_v53, %v215_v3  ;;  %v416_v7 = vpop.f32.mrb[14].mxu0 }
  0xf7   :  { %v280_v6 = vadd.f32 %v576_v53, %v279_v4  ;;  %v432_v8 = vpop.f32.mrb[14].mxu1  ;;  %v308_v9 = vmax.f32 %v224_v1, 0.0  ;;  %v227_v11 = vadd.f32 %v416_v7, %v576_v53  ;;  %v218_v13 = vpop.f32.mrb[15].mxu0 }
  0xf8   :  { %v324_v10 = vmax.f32 %v288_v2, 0.0  ;;  %v291_v12 = vadd.f32 %v432_v8, %v576_v53  ;;  %v282_v14 = vpop.f32.mrb[15].mxu1  ;;  %v306_v15 = vmax.f32 %v216_v5, 0.0  ;;  %v219_v17 = vadd.f32 %v576_v53, %v218_v13 }
  0xf9   :  { %v322_v16 = vmax.f32 %v280_v6, 0.0  ;;  %v283_v18 = vadd.f32 %v576_v53, %v282_v14  ;;  %341 = vst.msk [vmem:[%s741_s3 + $0x70] sm:$0xff] %vm326_vm3, %v308_v9  ;;  %v309_v19 = vmax.f32 %v227_v11, 0.0 }
  0xfa   :  { %357 = vst.msk [vmem:[%s741_s3 + $0xf0] sm:$0xff] %vm326_vm3, %v324_v10  ;;  %v325_v20 = vmax.f32 %v291_v12, 0.0  ;;  %339 = vst.msk [vmem:[%s741_s3 + $0x60] sm:$0xff] %vm326_vm3, %v306_v15  ;;  %v307_v53 = vmax.f32 %v219_v17, 0.0 }
  0xfb   :  { %355 = vst.msk [vmem:[%s741_s3 + $0xe0] sm:$0xff] %vm326_vm3, %v322_v16  ;;  %v323_v21 = vmax.f32 %v283_v18, 0.0  ;;  %342 = vst.msk [vmem:[%s741_s3 + $0x78] sm:$0xff] %vm326_vm3, %v309_v19 }
  0xfc   :  { %359 = vst.msk [vmem:[%s741_s3 + $0xf8] sm:$0xf] %vm358_vm4, %v325_v20 }
  0xfd   :  { %340 = vst.msk [vmem:[%s741_s3 + $0x68] sm:$0xff] %vm326_vm3, %v307_v53  ;;  %356 = vst.msk [vmem:[%s741_s3 + $0xe8] sm:$0xff] %vm326_vm3, %v323_v21 }

</bundles_post_ra>
